<compile_context>
chip_gen: v5e
topology: v5e:2x2
jax: 0.10.0
libtpu: 0.0.40
codegen_flags: <defaults>
</compile_context>

<pallas_src>
import functools
import math

import jax
import jax.numpy as jnp
from jax.experimental import pallas as pl
from jax.experimental.pallas import tpu as pltpu


def _attention_pool_kernel(q_ref, x_ref, o_ref, *, scale):
    """Pool one block of TB batch elements.

    q_ref: (1, H)        shared learned query (resident block)
    x_ref: (TB, S, H)    news representations (native dtype, streamed block)
    o_ref: (TB, 1, H)    pooled user representations
    """
    x = x_ref[...]                                   # (TB, S, H) native dtype
    tb, _, h = x.shape

    # Fold the 1/sqrt(H) scale into the tiny (1, H) query (cheaper than
    # scaling the (TB, S) score matrix), then broadcast to a batched query.
    q = (q_ref[...].astype(jnp.float32) * scale).astype(x.dtype)   # (1, H)
    q = jnp.broadcast_to(q[None], (tb, 1, h))                      # (TB, 1, H)

    # scores: (TB, 1, S).  x stays in its native dtype (no f32 block copy);
    # f32 accumulation on the MXU, which is otherwise idle here.
    s = jnp.einsum("bqh,bkh->bqk", q, x,
                   preferred_element_type=jnp.float32)

    # Numerically-stable softmax over the sequence axis.
    m = jnp.max(s, axis=-1, keepdims=True)                         # (TB, 1, 1)
    e = jnp.exp(s - m)                                             # (TB, 1, S)
    denom = jnp.sum(e, axis=-1, keepdims=True)                     # (TB, 1, 1)
    # Exact reciprocal: kernel is HBM-bound and denom is tiny, so the approx
    # EUP variant buys nothing but costs accuracy.
    w = e * pl.reciprocal(denom, approx=False)                     # (TB, 1, S)

    # ctx: (TB, 1, H) = batched contraction over S; x again stays native.
    ctx = jnp.einsum("bqk,bkh->bqh", w.astype(x.dtype), x,
                     preferred_element_type=jnp.float32)
    o_ref[...] = ctx.astype(o_ref.dtype)


def _vmem_budget_bytes():
    """Generation-aware VMEM limit: 3/4 of capacity (96 MiB on 128 MiB parts,
    48 MiB on v7x's 64 MiB), with a v7x-safe fallback when the query fails."""
    try:
        cap = pltpu.get_tpu_info().vmem_capacity_bytes
    except Exception:
        cap = None
    if not cap or cap <= 0:
        cap = 64 * 1024 * 1024
    return min((3 * cap) // 4, 100 * 1024 * 1024)


def _block_batch_size(B, S, H, itemsize, vmem_budget):
    """Batch rows per grid step (power of two)."""
    if B <= 1:
        return max(B, 1)
    bytes_per_row = S * H * itemsize
    # Target ~1/8 of the VMEM budget per native-dtype input block: with the
    # double-buffered input that is ~1/4 of budget, leaving room for the
    # resident query, output buffers, small f32 transients and scratch.
    rows = max(1, (vmem_budget // 8) // bytes_per_row)
    tb = 1 << (int(rows).bit_length() - 1)            # power of two <= rows
    tb = min(tb, 256)            # batched-matmul unroll / compile-time sanity
    # Hard VMEM-fit guard: two buffered copies of the block must fit easily.
    while tb > 1 and 2 * tb * bytes_per_row > (2 * vmem_budget) // 3:
        tb //= 2
    # Guarantee >=2 grid steps so both v7x TensorCores get work,
    while tb > 1 and B <= tb:
        tb //= 2
    # and prefer >=4 steps (per-core DMA/compute overlap) while blocks stay
    # comfortably large (>= ~2 MiB after halving).
    while tb > 8 and pl.cdiv(B, tb) < 4 and tb * bytes_per_row > 4 * 1024 * 1024:
        tb //= 2
    return tb


def attention_pooler(query_news: jax.Array, news_reprs: jax.Array) -> jax.Array:
    """query_news: (1, H); news_reprs: (B, S, H) -> (B, 1, H)."""
    B, S, H = news_reprs.shape
    assert query_news.shape == (1, H)
    dtype = news_reprs.dtype

    vmem_limit = _vmem_budget_bytes()
    tb = _block_batch_size(B, S, H, dtype.itemsize, vmem_limit)
    Bp = pl.cdiv(B, tb) * tb

    x = news_reprs
    if Bp != B:
        # Zero-padded batch rows produce finite (discarded) outputs: scores=0,
        # softmax uniform, ctx=0. Only triggered when B % tb != 0.
        x = jnp.pad(x, ((0, Bp - B), (0, 0), (0, 0)))

    scale = 1.0 / math.sqrt(H)
    kernel = functools.partial(_attention_pool_kernel, scale=scale)

    grid_spec = pltpu.PrefetchScalarGridSpec(
        num_scalar_prefetch=0,
        grid=(Bp // tb,),
        in_specs=[
            # query parameter: same (1, H) block every step -> stays resident
            pl.BlockSpec((1, H), lambda b: (0, 0)),
            # streamed batch block of news representations (native dtype)
            pl.BlockSpec((tb, S, H), lambda b: (b, 0, 0)),
        ],
        out_specs=pl.BlockSpec((tb, 1, H), lambda b: (b, 0, 0)),
    )

    out = pl.pallas_call(
        kernel,
        out_shape=jax.ShapeDtypeStruct((Bp, 1, H), dtype),
        grid_spec=grid_spec,
        compiler_params=pltpu.CompilerParams(
            dimension_semantics=("parallel",),   # shard batch blocks on v7x TCs
            vmem_limit_bytes=vmem_limit,
        ),
    )(query_news, x)

    return out if Bp == B else out[:B]


def _reference(query_news, news_reprs):
    """Pure-JAX reference mirroring torch scaled_attention (full-precision)."""
    h = query_news.shape[-1]
    score = jnp.einsum("qh,bsh->bqs", query_news, news_reprs,
                       precision=jax.lax.Precision.HIGHEST) / math.sqrt(h)
    weight = jax.nn.softmax(score, axis=-1)
    return jnp.einsum("bqs,bsh->bqh", weight, news_reprs,
                      precision=jax.lax.Precision.HIGHEST)


if __name__ == "__main__":
    key = jax.random.PRNGKey(0)
    k_q, k_x, k_x2 = jax.random.split(key, 3)

    batch, seq, hidden = 2, 8, 32

    # Deterministic xavier-normal init of query_news (shape (1, hidden)):
    # std = gain * sqrt(2 / (fan_in + fan_out)) with fan_in=1, fan_out=hidden.
    xavier_std = math.sqrt(2.0 / (1 + hidden))
    query_news = xavier_std * jax.random.normal(k_q, (1, hidden), dtype=jnp.float32)
    news_reprs = jax.random.normal(k_x, (batch, seq, hidden), dtype=jnp.float32)

    out = jax.block_until_ready(attention_pooler(query_news, news_reprs))
    ref = _reference(query_news, news_reprs)
    assert out.shape == (batch, 1, hidden), out.shape
    # Tolerance reflects TPU MXU f32 matmul numerics (possible bf16 multi-pass
    # decomposition) vs the HIGHEST-precision XLA reference.
    assert jnp.allclose(out, ref, atol=2e-3, rtol=2e-3), (
        float(jnp.max(jnp.abs(out - ref)))
    )

    # Second check exercising the multi-block / batch-padding path
    # (B=24 -> tb=16, grid=2, padded to 32) with a lane-dense H=128.
    b2, s2, h2 = 24, 8, 128
    q2 = math.sqrt(2.0 / (1 + h2)) * jax.random.normal(k_q, (1, h2), dtype=jnp.float32)
    x2 = jax.random.normal(k_x2, (b2, s2, h2), dtype=jnp.float32)
    out2 = jax.block_until_ready(attention_pooler(q2, x2))
    ref2 = _reference(q2, x2)
    assert out2.shape == (b2, 1, h2), out2.shape
    assert jnp.allclose(out2, ref2, atol=2e-3, rtol=2e-3), (
        float(jnp.max(jnp.abs(out2 - ref2)))
    )

    print("KERNEL_OK")
</pallas_src>

<mosaic_0001>
module attributes {stable_mosaic.version = 11 : i64} {
  func.func @_attention_pool_kernel(%arg0: i32, %arg1: memref<1x32xf32, #tpu.memory_space<vmem>>, %arg2: memref<1x8x32xf32, #tpu.memory_space<vmem>>, %arg3: memref<1x1x32xf32, #tpu.memory_space<vmem>>) attributes {dimension_semantics = [#tpu.dimension_semantics<parallel>], iteration_bounds = array<i64: 2>, scalar_prefetch = 0 : i64, scratch_operands = 0 : i64, tpu.core_type = #tpu.core_type<tc>, window_params = [{pipeline_mode = #tpu.pipeline_mode<synchronous>, transform_indices = @transform_0, window_bounds = array<i64: 1, 32>}, {transform_indices = @transform_1, window_bounds = array<i64: 1, 8, 32>}, {transform_indices = @transform_2, window_bounds = array<i64: 1, 1, 32>}]} {
    %c0 = arith.constant 0 : index
    %c0_0 = arith.constant 0 : index
    %c0_1 = arith.constant 0 : index
    %0 = vector.load %arg2[%c0, %c0_0, %c0_1] : memref<1x8x32xf32, #tpu.memory_space<vmem>>, vector<1x8x32xf32>
    %c0_2 = arith.constant 0 : index
    %c0_3 = arith.constant 0 : index
    %1 = vector.load %arg1[%c0_2, %c0_3] : memref<1x32xf32, #tpu.memory_space<vmem>>, vector<1x32xf32>
    %cst = arith.constant 0.176776692 : f32
    %2 = vector.broadcast %cst : f32 to vector<1x32xf32>
    %3 = arith.mulf %1, %2 : vector<1x32xf32>
    %4 = vector.shape_cast %3 : vector<1x32xf32> to vector<1x1x32xf32>
    "tpu.trace_start"() <{level = 10 : i32, message = "bqh,bkh->bqk"}> : () -> ()
    %cst_4 = arith.constant dense<0.000000e+00> : vector<1x1x8xf32>
    %5 = tpu.matmul %4, %0, %cst_4 {dimension_numbers = #tpu.dot_dimension_numbers<[2], [2], [1], [1], [0, 0, 0, 1, 1, 1], [0], [0]>} : vector<1x1x32xf32>, vector<1x8x32xf32>, vector<1x1x8xf32> -> vector<1x1x8xf32>
    "tpu.trace_stop"() : () -> ()
    %cst_5 = arith.constant dense<0xFF800000> : vector<1x1xf32>
    %6 = vector.multi_reduction <maximumf>, %5, %cst_5 [2] : vector<1x1x8xf32> to vector<1x1xf32>
    %7 = vector.shape_cast %6 : vector<1x1xf32> to vector<1x1x1xf32>
    %8 = vector.broadcast %7 : vector<1x1x1xf32> to vector<1x1x8xf32>
    %9 = arith.subf %5, %8 : vector<1x1x8xf32>
    %10 = math.exp %9 : vector<1x1x8xf32>
    %cst_6 = arith.constant dense<0.000000e+00> : vector<1x1xf32>
    %11 = vector.multi_reduction <add>, %10, %cst_6 [2] : vector<1x1x8xf32> to vector<1x1xf32>
    %12 = vector.shape_cast %11 : vector<1x1xf32> to vector<1x1x1xf32>
    %13 = tpu.reciprocal %12 : vector<1x1x1xf32> -> vector<1x1x1xf32>
    %14 = vector.broadcast %13 : vector<1x1x1xf32> to vector<1x1x8xf32>
    %15 = arith.mulf %10, %14 : vector<1x1x8xf32>
    "tpu.trace_start"() <{level = 10 : i32, message = "bqk,bkh->bqh"}> : () -> ()
    %cst_7 = arith.constant dense<0.000000e+00> : vector<1x1x32xf32>
    %16 = tpu.matmul %15, %0, %cst_7 {dimension_numbers = #tpu.dot_dimension_numbers<[2], [1], [1], [2], [0, 0, 0, 1, 1, 2], [0], [0]>} : vector<1x1x8xf32>, vector<1x8x32xf32>, vector<1x1x32xf32> -> vector<1x1x32xf32>
    "tpu.trace_stop"() : () -> ()
    %c0_8 = arith.constant 0 : index
    %c0_9 = arith.constant 0 : index
    %c0_10 = arith.constant 0 : index
    %17 = vector.load %arg3[%c0_8, %c0_9, %c0_10] : memref<1x1x32xf32, #tpu.memory_space<vmem>>, vector<1x1x32xf32>
    tpu.vector_store %arg3[%c0_8, %c0_9, %c0_10], %16 {strides = array<i32>} : memref<1x1x32xf32, #tpu.memory_space<vmem>>, vector<1x1x32xf32>,
    return
  }
  func.func @transform_0(%arg0: i32) -> (i32, i32) {
    %c0_i32 = arith.constant 0 : i32
    %c0_i32_0 = arith.constant 0 : i32
    %c0_i32_1 = arith.constant 0 : i32
    return %c0_i32, %c0_i32_0 : i32, i32
  }
  func.func @transform_1(%arg0: i32) -> (i32, i32, i32) {
    %c0_i32 = arith.constant 0 : i32
    %c0_i32_0 = arith.constant 0 : i32
    %c0_i32_1 = arith.constant 0 : i32
    return %arg0, %c0_i32, %c0_i32_0 : i32, i32, i32
  }
  func.func @transform_2(%arg0: i32) -> (i32, i32, i32) {
    %c0_i32 = arith.constant 0 : i32
    %c0_i32_0 = arith.constant 0 : i32
    %c0_i32_1 = arith.constant 0 : i32
    return %arg0, %c0_i32, %c0_i32_0 : i32, i32, i32
  }
}

</mosaic_0001>

<bundles_post_ra>
// kernel: tpu_custom_call.1
= control target key start
LH: loop header
LB: loop body
LE: loop exit
PB: predicated region body
PF: predicated region fallthrough
CT: control target
= control target key end

     0   :  { %7 = vsyncpa [#allocation3], 0  ;;  %s709_s0 = inlined_call_operand.hbm [shape: f32[1,32], index: 0, kind: input, shape index: {}]   ;;  %s710_s1 = inlined_call_operand.hbm [shape: f32[2,8,32], index: 1, kind: input, shape index: {}]   ;;  %s711_s2 = inlined_call_operand.hbm [shape: f32[2,1,32], index: 2, kind: output, shape index: {}]  }
   0x1   :  { %8 = vsyncpa [#allocation6], 0 }
   0x2   :  { %10 = vsyncpa [#allocation6 + $0x1], 0 }
   0x3   :  { %11 = vsyncpa [#allocation4], 0 }
   0x4   :  { %13 = vsyncpa [#allocation4 + $0x1], 0  ;;  %s570_s9 = smov 0   ;;  %s572_s10 = smov 0  }
   0x5   :  { %s574_s11 = smov 0   ;;  %s576_s12 = smov 0  }
   0x6 LB: > { %s591_s13 = sadd.s32 4294967295, %s552_s12   ;;  %s347_s14 = sadd.s32 4294967294, %s552_s12   ;;  %s552_s12 = sphi %s576_s12, %s721_s12   ;;  %s548_s11 = sphi %s574_s11, %s720_s11   ;;  %s544_s10 = sphi %s572_s10, %s719_s10   ;;  %s540_s9 = sphi %s570_s9, %s718_s9  }
   0x7   : > { %p60_p0 = scmp.ne.s32.totalorder %s544_s10, %s540_s9  ;;  %p61_p1 = scmp.eq.s32.totalorder %s591_s13, 0 }
   0x8   : > { %p84_p2 = scmp.eq.s32.totalorder %s591_s13, 1  ;;  %p90_p3 = scmp.eq.s32.totalorder %s347_s14, 1 }
   0x9   : > { %p600_p4 = por %p61_p1, %p60_p0  ;;  %p348_p5 = scmp.ge.s32.totalorder %s552_s12, 1 }
   0xa   : > { %p605_p6 = por %p90_p3, %p60_p0  ;;  %p97_p7 = scmp.lt.s32.totalorder %s552_s12, 3 }
   0xb   : > { %s109_s19 = sshll.u32 %s709_s0, 4  ;;  %s554_s21 = smov [#allocation2]   ;;  %s110_s19 = int_to_ptr.hbm [resolvable:$true] %s109_s19 }
   0xc   : > { %p613_p8 = pnand %p348_p5, %p97_p7  ;;  %s111_s22 = sshll.u32 %s554_s21, 4  ;;  %s112_s22 = int_to_ptr.vmem [resolvable:$true] %s111_s22 }
   0xd   : > { %s623_s23 = sadd.s32 1, %s552_s12   ;;  %s47_s24 = sadd.s32 1, %s548_s11 }
   0xe   : > { %p369_p10 = pneg %p613_p8  ;;  %s44_s25 = ssub.s32 %s552_s12, %s623_s23 }
   0xf   : > { %p45_p12 = scmp.eq.s32.totalorder %s44_s25, 0  ;;  %p54_p13 = scmp.ne.s32.totalorder %s548_s11, %s544_s10 }
  0x10   : > { %p370_p11 = pnand %p369_p10, %p61_p1  ;;  %p55_p0 = scmp.eq.s32.totalorder %s552_s12, 0 }
  0x11   : > { %s632_s26 = scalar_select %p45_p12, %s548_s11, %s47_s24  }
  0x12   : > { %372 = dma.hbm_to_vmem [thread:$0]  (!%p370_p11), %s110_s19, 16, %s112_s22, [#allocation3]  }
  0x13   : > { %p636_p3 = por %p84_p2, %p54_p13  ;;  %p382_p5 = scmp.lt.s32.totalorder %s552_s12, 2 }
  0x14   : > { %s122_s28 = sand.u32 1, %s548_s11   ;;  %s352_s29 = sshll.u32 %s552_s12, 3 }
  0x15   : > { %p56_p7 = por %p55_p0, %p54_p13  ;;  %s351_s30 = sshll.u32 %s122_s28, 3 }
  0x16   : > { %s130_s5 = scalar_lea.hbm %s710_s1, %s352_s29  ;;  %s126_s7 = scalar_lea.vmem [#allocation5], %s351_s30 }
  0x17   : > { %s132_s6 = sshll.u32 %s130_s5, 4  ;;  %s134_s8 = sshll.u32 %s126_s7, 4  ;;  %s133_s6 = int_to_ptr.hbm [resolvable:$true] %s132_s6  ;;  %s135_s8 = int_to_ptr.vmem [resolvable:$true] %s134_s8 }
  0x18   : > { %p646_p10 = pnand %p382_p5, %p56_p7  ;;  %s123_s17 = scalar_lea.sflag [#allocation6], %s122_s28 }
  0x19   : > { %s452_s18 = sshra.s32 %s133_s6, 4  ;;  %s459_s24 = scalar_lea.hbm %s710_s1, 16  ;;  %s453_s18 = int_to_ptr.hbm [resolvable:$true] %s452_s18 }
  0x1a   : > { %s454_s19 = scalar_lea.hbm %s453_s18, 8  ;;  %p456_p11 = pneg %p646_p10 }
  0x1b   : > { %p455_p2 = scmp.ne.s32.totalorder %s453_s18, %s454_s19  ;;  %p460_p0 = scmp.lt.s32.totalorder %s453_s18, %s710_s1 }
  0x1c   : > { %p461_p5 = scmp.lt.s32.totalorder %s459_s24, %s454_s19 }
  0x1d   : > { %p457_p12 = pnand %p456_p11, %p455_p2 }
  0x1e   : > { %p462_p7 = por %p461_p5, %p460_p0 }
  0x1f   : > { %p458_p13 = pneg %p457_p12 }
  0x21   : > { %p463_p9 = pnand %p462_p7, %p458_p13 }
  0x23   : > { %466 = shalt.err (!%p463_p9)
}
  0x24   : > { %376 = dma.hbm_to_vmem [thread:$0]  (!%p646_p10), %s133_s6, 128, %s135_s8, %s123_s17  }
  0x25   : > { %143 = sbr.rel (%p613_p8) target bundleno = 570 (0x23a), region = 28 }
  0x2a   : > { %527 = dma.done.wait (%p61_p1), [#allocation3], 16  }
  0x2b   : > { %529 = vsyncadd (%p61_p1), [#allocation3], 4294967280  ;;  %s667_s28 = sand.u32 1, %s544_s10  }
  0x2c   : > { %s355_s30 = sshll.u32 %s667_s28, 3  ;;  %s151_s3 = scalar_lea.sflag [#allocation6], %s667_s28 }
  0x2d   : > { %s154_s4 = scalar_lea.vmem [#allocation5], %s355_s30 }
  0x2e   : > { %531 = dma.done.wait (%p600_p4), %s151_s3, 128  }
  0x2f   : > { %533 = vsyncadd (%p600_p4), %s151_s3, 4294967168  ;;  %vm178_vm0 = vcmask 261120   ;;  %v175_v0 = vld [vmem:[%s154_s4] sm:$0xff]  ;;  %v176_v1 = vld [vmem:[#allocation2] sm:$0x1]  ;;  %vm205_vm1 = vcmask 57344   ;;  %s265_s5 = scalar_lea.hbm %s711_s2, %s591_s13 }
  0x30   : > { %356 = vmatpush.xpose.msk.msra.mxu0 %vm178_vm0, %v175_v0  ;;  %v177_v2 = vmul.f32 0.17677669, %v176_v1  ;;  %249 = vmatpush.msra.mxu1 %v175_v0  ;;  %vm230_vm6 = vcmask 64512   ;;  %s174_s6 = scalar_lea.vmem [#allocation7], %s667_s28  ;;  %s269_s8 = sshll.u32 %s265_s5, 4  ;;  %vm254_vm7 = vcmask 253952   ;;  %s270_s8 = int_to_ptr.hbm [resolvable:$true] %s269_s8 }
  0x31   : > { %s267_s7 = sshll.u32 %s174_s6, 4  ;;  %s257_s14 = scalar_lea.sflag [#allocation4], %s667_s28  ;;  %s268_s7 = int_to_ptr.vmem [resolvable:$true] %s267_s7 }
  0x32   : > { %s496_s17 = sshra.s32 %s270_s8, 4  ;;  %s502_s13 = scalar_lea.hbm %s711_s2, 2  ;;  %s497_s17 = int_to_ptr.hbm [resolvable:$true] %s496_s17 }
  0x33   : > { %357 = vmatmul.msk.f32.vlgmr.msra.gmra.mxu0 %vm178_vm0, %v177_v2  ;;  %s498_s18 = scalar_lea.hbm %s497_s17, 1  ;;  %p503_p9 = scmp.lt.s32.totalorder %s497_s17, %s711_s2 }
  0x34   : > { %p499_p1 = scmp.ne.s32.totalorder %s497_s17, %s498_s18  ;;  %p504_p10 = scmp.lt.s32.totalorder %s502_s13, %s498_s18 }
  0x36   : > { %p500_p4 = pnand %p499_p1, %p636_p3  ;;  %p505_p2 = por %p504_p10, %p503_p9 }
  0x38   : > { %p501_p8 = pneg %p500_p4 }
  0x3a   : > { %p506_p11 = pnand %p505_p2, %p501_p8 }
  0xb0   : > { %v202_v3 = vpop.f32.mrf.mxu0 }
  0xb1   : > { %v206_v4 = vsel %vm205_vm1, %v202_v3, -inf }
  0xb2   : > { %207 = vmax.xlane.f32.xlu0 %v206_v4 }
 0x125   : > { %v208_v5 = vpop.xlane.xlu0 %207 }
 0x126   : > { %v209_v6 = vsub.f32 %v202_v3, %v208_v5 }
 0x128   : > { %v210_v7 = vmul.f32 1.442695, %v209_v6 }
 0x12a   : > { %418 = vpow2.f32 %v210_v7 }
 0x130   : > { %v419_v8 = vpop.eup %418 }
 0x131   : > { %v212_v9 = vsel %vm205_vm1, %v419_v8, 0.0 }
 0x132   : > { %213 = vadd.xlane.f32.xlu0 %v212_v9 }
 0x1a5   : > { %v214_v10 = vpop.xlane.xlu0 %213 }
 0x1a6   : > { %420 = vrcp.f32 %v214_v10  ;;  %v226_v14 = vand.u32 2147483648, %v214_v10  ;;  %v224_v16 = vand.u32 2147483647, %v214_v10  ;;  %vm220_vm3 = vweird.f32 %v214_v10 }
 0x1a8   : > { %v227_v18 = vor.u32 1.1754944e-38, %v226_v14  ;;  %vm225_vm5 = vcmp.eq.f32.partialorder %v224_v16, 8.507059e+37 }
 0x1ac   : > { %v421_v11 = vpop.eup %420 }
 0x1ad   : > { %v216_v12 = vmul.f32 %v421_v11, %v214_v10  ;;  %vm221_vm2 = vweird.f32 %v421_v11 }
 0x1ae   : > { %vm222_vm4 = vmor %vm220_vm3, %vm221_vm2 }
 0x1af   : > { %v217_v13 = vsub.f32 1.0, %v216_v12 }
 0x1b1   : > { %v218_v15 = vmul.f32 %v421_v11, %v217_v13 }
 0x1b3   : > { %v219_v17 = vadd.f32 %v421_v11, %v218_v15 }
 0x1b5   : > { %v223_v19 = vsel %vm222_vm4, %v421_v11, %v219_v17 }
 0x1b6   : > { %v228_v20 = vsel %vm225_vm5, %v227_v18, %v223_v19 }
 0x1b7   : > { %v229_v21 = vmul.f32 %v419_v8, %v228_v20 }
 0x1b9   : > { %358 = vmatmul.msk.f32.vlgmr.msra.gmra.mxu1 %vm230_vm6, %v229_v21 }
 0x236   : > { %v251_v22 = vpop.f32.mrf.mxu1 }
 0x237   : > { %255 = vst.msk [vmem:[%s174_s6] sm:$0x1] %vm254_vm7, %v251_v22 }
 0x238   : > { %509 = shalt.err (!%p506_p11)
}
 0x239   : > { %367 = dma.vmem_to_hbm [thread:$0]  (%p636_p3), %s268_s7, 16, %s270_s8, %s257_s14  }
 0x23a PF: > { %s281_s25 = sand.u32 1, %s540_s9   ;;  %p717_p12 = scmp.ge.s32.totalorder %s552_s12, 2 }
 0x23b   : > { %s282_s29 = scalar_lea.sflag [#allocation4], %s281_s25 }
 0x23c   : > { %p378_p13 = pnand %p717_p12, %p605_p6 }
 0x23e   : > { %p379_p0 = pneg %p378_p13 }
 0x240   : > { %535 = dma.done.wait (%p379_p0), %s282_s29, 16  }
 0x241   : > { %537 = vsyncadd (%p379_p0), %s282_s29, 4294967280  ;;  %p16_p5 = scmp.ge.s32.totalorder %s623_s23, 4   ;;  %s718_s9 = smov %s544_s10 }
 0x242   : > { %s719_s10 = smov %s548_s11  ;;  %s720_s11 = smov %s632_s26 }
 0x243   : > { %s721_s12 = smov %s623_s23  ;;  %18 = sbr.rel (!%p16_p5) target bundleno = 6 (0x6), region = 78 }
 0x248   :  { %287 = vsyncpa [#allocation3], 1 }
 0x249   :  { %289 = vsyncpa [#allocation3 + $0x1], 1 }
 0x24a   :  { %290 = vsyncpa [#allocation6], 1 }
 0x24b   :  { %292 = vsyncpa [#allocation6 + $0x1], 1 }
 0x24c   :  { %293 = vsyncpa [#allocation4], 1 }
 0x24d   :  { %295 = vsyncpa [#allocation4 + $0x1], 1 }

</bundles_post_ra>
